<compile_context>
chip_gen: v6e
topology: v6e:2x2x1
jax: 0.10.0
libtpu: 0.0.40
codegen_flags: <defaults>
</compile_context>

<pallas_src>
import functools

import jax
import jax.numpy as jnp
from jax.experimental import pallas as pl
from jax.experimental.pallas import tpu as pltpu

HIDDEN = 256            # 2**8 for each of layers = [8, 8, 8]
OUT_PAD = 128           # lane-padded width of the final Linear inside the kernels
BN_EPS = 1e-7           # matches nn.BatchNorm1d(..., eps=1e-07)
TILE_M = 256            # batch-tile rows for the gridded path (multiple of 256/128 MXU)
FUSED_MAX_ROWS = 2048   # whole-batch fused kernel up to this many rows

_VMEM = pl.BlockSpec(memory_space=pltpu.MemorySpace.VMEM)


def _round_up(x, m):
    return (x + m - 1) // m * m


def _softplus_torch(x):
    # PyTorch nn.Softplus(beta=1, threshold=20): x if x > 20 else log1p(exp(x)).
    return jnp.where(x > 20.0, x, jnp.log1p(jnp.exp(jnp.minimum(x, 20.0))))


# --------------------------------------------------------------------------------------
# Path 1: fused whole-batch kernel (small/medium batches)
# --------------------------------------------------------------------------------------
def _fused_kernel(n_real, x_ref, w1_ref, w2_ref, w3_ref, w4_ref, b_ref, o_ref):
    rows = x_ref.shape[0]
    out_ch = o_ref.shape[1]
    inv_n = 1.0 / n_real
    if rows == n_real:
        mask = None
    else:  # batch padded to a sublane multiple: keep pad rows out of the BN stats.
        row_id = jax.lax.broadcasted_iota(jnp.int32, (rows, 1), 0)
        mask = (row_id < n_real).astype(jnp.float32)

    def linear(h_bf16, w_ref, b):
        # bf16 operands -> single-pass MXU issue; accumulate in f32.
        return jnp.dot(h_bf16, w_ref[...], preferred_element_type=jnp.float32) + b

    def relu_bn(h):
        # ReLU, then training-mode BN *normalization* only (affine folded into the next
        # Linear on the host).  One pass: var = E[h^2] - mean^2, clamped >= 0.
        h = jnp.maximum(h, 0.0)
        hm = h if mask is None else h * mask
        mean = jnp.sum(hm, axis=0, keepdims=True) * inv_n
        ex2 = jnp.sum(hm * hm, axis=0, keepdims=True) * inv_n
        var = jnp.maximum(ex2 - mean * mean, 0.0)
        return ((h - mean) * jax.lax.rsqrt(var + BN_EPS)).astype(jnp.bfloat16)

    h = relu_bn(linear(x_ref[...], w1_ref, b_ref[0:1, :]))
    h = relu_bn(linear(h, w2_ref, b_ref[1:2, :]))
    h = relu_bn(linear(h, w3_ref, b_ref[2:3, :]))
    y = linear(h, w4_ref, b_ref[3:4, :OUT_PAD])      # (rows, OUT_PAD), lane-dense MXU
    o_ref[...] = _softplus_torch(y[:, :out_ch])      # small (rows, out_ch) writeback


# --------------------------------------------------------------------------------------
# Path 2: batch-tiled grid with two-pass BN (large batches)
# --------------------------------------------------------------------------------------
def _bn_lin_relu_stats_kernel(n_real, tile_m, h_ref, aux_ref, w_ref, b_ref, o_ref, st_ref):
    """Normalize with previous-layer stats, Linear + ReLU, emit per-tile BN partial stats."""
    base = pl.program_id(0) * tile_m
    aux = aux_ref[...]                                   # (2, cols_in): [mean; inv_std]
    hn = ((h_ref[...].astype(jnp.float32) - aux[0:1]) * aux[1:2]).astype(jnp.bfloat16)
    h = jnp.dot(hn, w_ref[...], preferred_element_type=jnp.float32) + b_ref[...]
    h = jnp.maximum(h, 0.0)
    # Mask padded rows out of the statistics (n_real is static).
    row_id = base + jax.lax.broadcasted_iota(jnp.int32, (tile_m, 1), 0)
    hm = h * (row_id < n_real).astype(jnp.float32)
    s = jnp.sum(hm, axis=0, keepdims=True)
    s2 = jnp.sum(hm * hm, axis=0, keepdims=True)
    st_ref[...] = jnp.concatenate([s, s2], axis=0).reshape(1, 2, HIDDEN)
    o_ref[...] = h.astype(o_ref.dtype)


def _bn_lin_softplus_kernel(h_ref, aux_ref, w_ref, b_ref, o_ref):
    aux = aux_ref[...]
    hn = ((h_ref[...].astype(jnp.float32) - aux[0:1]) * aux[1:2]).astype(jnp.bfloat16)
    y = jnp.dot(hn, w_ref[...], preferred_element_type=jnp.float32) + b_ref[...]
    o_ref[...] = _softplus_torch(y[:, :o_ref.shape[1]])


def _finish_stats(partials, n_real):
    """Reduce per-tile (sum, sumsq) partials -> packed (2, C) [mean; inv_std]."""
    s = jnp.sum(partials, axis=0)                        # (2, C)
    mean = s[0:1] / n_real
    var = jnp.maximum(s[1:2] / n_real - mean * mean, 0.0)
    return jnp.concatenate([mean, jax.lax.rsqrt(var + BN_EPS)], axis=0)


def _tiled_forward(x_bf, weights, bias, out_ch, n_real, tile_m=TILE_M):
    w1, w2, w3, w4p = weights
    rows, c_in = x_bf.shape
    nt = rows // tile_m

    def resident(arr):  # fetched once, stays resident across all batch tiles
        return pl.BlockSpec(arr.shape, lambda i, nd=arr.ndim: (0,) * nd)

    def row_spec(cols):
        return pl.BlockSpec((tile_m, cols), lambda i: (i, 0))

    st_spec = pl.BlockSpec((1, 2, HIDDEN), lambda i: (i, 0, 0))
    st_shape = jax.ShapeDtypeStruct((nt, 2, HIDDEN), jnp.float32)
    cp = pltpu.CompilerParams(dimension_semantics=("parallel",),
                              vmem_limit_bytes=32 * 1024 * 1024)

    def layer(h, aux, w, b):
        h_next, st = pl.pallas_call(
            functools.partial(_bn_lin_relu_stats_kernel, n_real, tile_m),
            grid=(nt,),
            in_specs=[row_spec(h.shape[1]), resident(aux), resident(w), resident(b)],
            out_specs=[row_spec(HIDDEN), st_spec],
            out_shape=[jax.ShapeDtypeStruct((rows, HIDDEN), jnp.float32), st_shape],
            compiler_params=cp,
        )(h, aux, w, b)
        return h_next, _finish_stats(st, n_real)

    # Layer 1 uses an identity "normalization" (mean=0, inv_std=1) so one kernel serves all.
    aux = jnp.concatenate([jnp.zeros((1, c_in), jnp.float32),
                           jnp.ones((1, c_in), jnp.float32)], axis=0)
    h, aux = layer(x_bf, aux, w1, bias[0:1])
    h, aux = layer(h, aux, w2, bias[1:2])
    h, aux = layer(h, aux, w3, bias[2:3])

    b4 = bias[3:4, :OUT_PAD]
    out = pl.pallas_call(
        _bn_lin_softplus_kernel,
        grid=(nt,),
        in_specs=[row_spec(HIDDEN), resident(aux), resident(w4p), resident(b4)],
        out_specs=row_spec(out_ch),
        out_shape=jax.ShapeDtypeStruct((rows, out_ch), jnp.float32),
        compiler_params=cp,
    )(h, aux, w4p, b4)
    return out


# --------------------------------------------------------------------------------------
# Host-side parameter prep + dispatch
# --------------------------------------------------------------------------------------
def prepare_params(params):
    """Fold each BN affine into the following Linear, cast weights to bf16, pad the final
    Linear to OUT_PAD lanes, and pack biases into one (4, HIDDEN) slab."""
    w1, b1 = params["w1"], params["b1"]
    w2 = params["g1"].reshape(-1, 1) * params["w2"]
    b2 = params["be1"] @ params["w2"] + params["b2"]
    w3 = params["g2"].reshape(-1, 1) * params["w3"]
    b3 = params["be2"] @ params["w3"] + params["b3"]
    w4 = params["g3"].reshape(-1, 1) * params["w4"]
    b4 = params["be3"] @ params["w4"] + params["b4"]

    out_ch = w4.shape[1]
    assert out_ch <= OUT_PAD
    w4p = jnp.zeros((w4.shape[0], OUT_PAD), jnp.float32).at[:, :out_ch].set(w4)

    bias = jnp.zeros((4, HIDDEN), jnp.float32)
    bias = bias.at[0, :].set(b1[0])
    bias = bias.at[1, :].set(b2[0])
    bias = bias.at[2, :].set(b3[0])
    bias = bias.at[3, :out_ch].set(b4[0])

    weights = tuple(w.astype(jnp.bfloat16) for w in (w1, w2, w3, w4p))
    return weights, bias, out_ch


def msci_forward(x, weights, bias, out_ch, force_tiled=False):
    n, c_in = x.shape
    x_bf = x.astype(jnp.bfloat16)   # the only O(N) input: halve its HBM->VMEM bytes

    if n <= FUSED_MAX_ROWS and not force_tiled:
        rows = _round_up(n, 8)
        if rows != n:
            x_bf = jnp.pad(x_bf, ((0, rows - n), (0, 0)))
        w1, w2, w3, w4p = weights
        flops = 2 * rows * (c_in * HIDDEN + 2 * HIDDEN * HIDDEN + HIDDEN * OUT_PAD)
        bytes_accessed = (rows * c_in * 2 + sum(int(w.size) for w in weights) * 2
                          + int(bias.size) * 4 + rows * out_ch * 4)
        # ~4 KiB/row of live f32 activations; leave slack for weights + I/O buffers.
        vmem_limit = int(min(64 * 1024 * 1024, 8 * 1024 * 1024 + rows * 6 * 1024))
        out = pl.pallas_call(
            functools.partial(_fused_kernel, n),
            out_shape=jax.ShapeDtypeStruct((rows, out_ch), jnp.float32),
            in_specs=[_VMEM] * 6,
            out_specs=_VMEM,
            compiler_params=pltpu.CompilerParams(vmem_limit_bytes=vmem_limit),
            cost_estimate=pl.CostEstimate(
                flops=flops,
                transcendentals=2 * rows * out_ch + 3 * HIDDEN,
                bytes_accessed=bytes_accessed),
        )(x_bf, w1, w2, w3, w4p, bias)
        return out[:n]

    # Large batch: batch-tiled grid (parallel), two-pass BN, weights resident.
    rows = _round_up(n, TILE_M)
    if rows != n:
        x_bf = jnp.pad(x_bf, ((0, rows - n), (0, 0)))
    return _tiled_forward(x_bf, weights, bias, out_ch, n)[:n]


# --------------------------------------------------------------------------------------
# Synthetic params + pure-JAX reference
# --------------------------------------------------------------------------------------
def init_params(key, input_channel, output_channel):
    """Deterministic synthetic parameters (PyTorch-shape-equivalent, transposed)."""
    ks = jax.random.split(key, 14)
    dims = [input_channel, HIDDEN, HIDDEN, HIDDEN, output_channel]
    p = {}
    for i in range(4):
        scale = 1.0 / jnp.sqrt(jnp.float32(dims[i]))
        p[f"w{i+1}"] = jax.random.uniform(
            ks[2 * i], (dims[i], dims[i + 1]), jnp.float32, -scale, scale)
        p[f"b{i+1}"] = jax.random.uniform(
            ks[2 * i + 1], (1, dims[i + 1]), jnp.float32, -scale, scale)
    # Perturbed BN affine so the host-side folding is actually exercised.
    for i in range(3):
        p[f"g{i+1}"] = 1.0 + 0.2 * jax.random.normal(ks[8 + 2 * i], (1, HIDDEN), jnp.float32)
        p[f"be{i+1}"] = 0.1 * jax.random.normal(ks[9 + 2 * i], (1, HIDDEN), jnp.float32)
    return p


def reference_forward(x, params):
    """Pure-JAX f32 reference with the original (unfolded) parameterization."""
    h = x
    for i in range(1, 4):
        h = jnp.maximum(h @ params[f"w{i}"] + params[f"b{i}"], 0.0)
        mean = jnp.mean(h, axis=0, keepdims=True)
        var = jnp.mean((h - mean) ** 2, axis=0, keepdims=True)
        h = (h - mean) / jnp.sqrt(var + BN_EPS) * params[f"g{i}"] + params[f"be{i}"]
    h = h @ params["w4"] + params["b4"]
    return jnp.where(h > 20.0, h, jnp.log1p(jnp.exp(jnp.minimum(h, 20.0))))


if __name__ == "__main__":
    key = jax.random.PRNGKey(0)
    k_x1, k_x2, k_p = jax.random.split(key, 3)

    input_channel = 32
    output_channel = 4
    params = init_params(k_p, input_channel, output_channel)
    weights, bias, out_ch = prepare_params(params)

    # Path 1: fused whole-batch kernel (row padding + stat masking exercised).
    batch1 = 10
    x1 = jax.random.normal(k_x1, (batch1, input_channel), jnp.float32)
    out1 = jax.block_until_ready(msci_forward(x1, weights, bias, out_ch))
    ref1 = reference_forward(x1, params)
    assert out1.shape == (batch1, output_channel)
    assert jnp.allclose(out1, ref1, atol=1e-1, rtol=1e-1), "fused path mismatch vs reference"

    # Path 2: batch-tiled grid with two-pass BN (3 tiles, last tile partially masked).
    batch2 = 600
    x2 = jax.random.normal(k_x2, (batch2, input_channel), jnp.float32)
    out2 = jax.block_until_ready(msci_forward(x2, weights, bias, out_ch, force_tiled=True))
    ref2 = reference_forward(x2, params)
    assert out2.shape == (batch2, output_channel)
    assert jnp.allclose(out2, ref2, atol=1e-1, rtol=1e-1), "tiled path mismatch vs reference"

    print("KERNEL_OK")
</pallas_src>

<mosaic_0001>
module attributes {stable_mosaic.version = 11 : i64} {
  func.func @_fused_kernel(%arg0: memref<16x32xbf16, #tpu.memory_space<vmem>>, %arg1: memref<32x256xbf16, #tpu.memory_space<vmem>>, %arg2: memref<256x256xbf16, #tpu.memory_space<vmem>>, %arg3: memref<256x256xbf16, #tpu.memory_space<vmem>>, %arg4: memref<256x128xbf16, #tpu.memory_space<vmem>>, %arg5: memref<4x256xf32, #tpu.memory_space<vmem>>, %arg6: memref<16x4xf32, #tpu.memory_space<vmem>>) attributes {dimension_semantics = [], scalar_prefetch = 0 : i64, scratch_operands = 0 : i64, tpu.core_type = #tpu.core_type<tc>} {
    %0 = tpu.iota {dimensions = array<i32: 0>} : vector<16x1xi32>
    %c10_i32 = arith.constant 10 : i32
    %1 = vector.broadcast %c10_i32 : i32 to vector<16x1xi32>
    %2 = arith.cmpi slt, %0, %1 : vector<16x1xi32>
    %3 = arith.extui %2 : vector<16x1xi1> to vector<16x1xi32>
    %4 = arith.sitofp %3 : vector<16x1xi32> to vector<16x1xf32>
    %c0 = arith.constant 0 : index
    %c0_0 = arith.constant 0 : index
    %5 = vector.load %arg0[%c0, %c0_0] : memref<16x32xbf16, #tpu.memory_space<vmem>>, vector<16x32xbf16>
    %c0_1 = arith.constant 0 : index
    %c0_2 = arith.constant 0 : index
    %6 = vector.load %arg5[%c0_1, %c0_2] : memref<4x256xf32, #tpu.memory_space<vmem>>, vector<1x256xf32>
    %c0_3 = arith.constant 0 : index
    %c0_4 = arith.constant 0 : index
    %7 = vector.load %arg1[%c0_3, %c0_4] : memref<32x256xbf16, #tpu.memory_space<vmem>>, vector<32x256xbf16>
    %cst = arith.constant dense<0.000000e+00> : vector<16x256xf32>
    %8 = tpu.matmul %5, %7, %cst {dimension_numbers = #tpu.dot_dimension_numbers<[1], [0], [0], [1], [0, 0, 1, 1], [], []>} : vector<16x32xbf16>, vector<32x256xbf16>, vector<16x256xf32> -> vector<16x256xf32>
    %9 = vector.broadcast %6 : vector<1x256xf32> to vector<16x256xf32>
    %10 = arith.addf %8, %9 : vector<16x256xf32>
    %cst_5 = arith.constant 0.000000e+00 : f32
    %11 = vector.broadcast %cst_5 : f32 to vector<16x256xf32>
    %12 = arith.maximumf %10, %11 : vector<16x256xf32>
    %13 = vector.broadcast %4 : vector<16x1xf32> to vector<16x256xf32>
    %14 = arith.mulf %12, %13 : vector<16x256xf32>
    %cst_6 = arith.constant dense<0.000000e+00> : vector<256xf32>
    %15 = vector.multi_reduction <add>, %14, %cst_6 [0] : vector<16x256xf32> to vector<256xf32>
    %16 = vector.shape_cast %15 : vector<256xf32> to vector<1x256xf32>
    %cst_7 = arith.constant 1.000000e-01 : f32
    %17 = vector.broadcast %cst_7 : f32 to vector<1x256xf32>
    %18 = arith.mulf %16, %17 : vector<1x256xf32>
    %19 = arith.mulf %14, %14 : vector<16x256xf32>
    %cst_8 = arith.constant dense<0.000000e+00> : vector<256xf32>
    %20 = vector.multi_reduction <add>, %19, %cst_8 [0] : vector<16x256xf32> to vector<256xf32>
    %21 = vector.shape_cast %20 : vector<256xf32> to vector<1x256xf32>
    %cst_9 = arith.constant 1.000000e-01 : f32
    %22 = vector.broadcast %cst_9 : f32 to vector<1x256xf32>
    %23 = arith.mulf %21, %22 : vector<1x256xf32>
    %24 = arith.mulf %18, %18 : vector<1x256xf32>
    %25 = arith.subf %23, %24 : vector<1x256xf32>
    %cst_10 = arith.constant 0.000000e+00 : f32
    %26 = vector.broadcast %cst_10 : f32 to vector<1x256xf32>
    %27 = arith.maximumf %25, %26 : vector<1x256xf32>
    %28 = vector.broadcast %18 : vector<1x256xf32> to vector<16x256xf32>
    %29 = arith.subf %12, %28 : vector<16x256xf32>
    %cst_11 = arith.constant 1.000000e-07 : f32
    %30 = vector.broadcast %cst_11 : f32 to vector<1x256xf32>
    %31 = arith.addf %27, %30 : vector<1x256xf32>
    %32 = math.rsqrt %31 : vector<1x256xf32>
    %33 = vector.broadcast %32 : vector<1x256xf32> to vector<16x256xf32>
    %34 = arith.mulf %29, %33 : vector<16x256xf32>
    %35 = arith.truncf %34 : vector<16x256xf32> to vector<16x256xbf16>
    %c1 = arith.constant 1 : index
    %c0_12 = arith.constant 0 : index
    %36 = vector.load %arg5[%c1, %c0_12] : memref<4x256xf32, #tpu.memory_space<vmem>>, vector<1x256xf32>
    %c0_13 = arith.constant 0 : index
    %c0_14 = arith.constant 0 : index
    %37 = vector.load %arg2[%c0_13, %c0_14] : memref<256x256xbf16, #tpu.memory_space<vmem>>, vector<256x256xbf16>
    %cst_15 = arith.constant dense<0.000000e+00> : vector<16x256xf32>
    %38 = tpu.matmul %35, %37, %cst_15 {dimension_numbers = #tpu.dot_dimension_numbers<[1], [0], [0], [1], [0, 0, 1, 1], [], []>} : vector<16x256xbf16>, vector<256x256xbf16>, vector<16x256xf32> -> vector<16x256xf32>
    %39 = vector.broadcast %36 : vector<1x256xf32> to vector<16x256xf32>
    %40 = arith.addf %38, %39 : vector<16x256xf32>
    %cst_16 = arith.constant 0.000000e+00 : f32
    %41 = vector.broadcast %cst_16 : f32 to vector<16x256xf32>
    %42 = arith.maximumf %40, %41 : vector<16x256xf32>
    %43 = vector.broadcast %4 : vector<16x1xf32> to vector<16x256xf32>
    %44 = arith.mulf %42, %43 : vector<16x256xf32>
    %cst_17 = arith.constant dense<0.000000e+00> : vector<256xf32>
    %45 = vector.multi_reduction <add>, %44, %cst_17 [0] : vector<16x256xf32> to vector<256xf32>
    %46 = vector.shape_cast %45 : vector<256xf32> to vector<1x256xf32>
    %cst_18 = arith.constant 1.000000e-01 : f32
    %47 = vector.broadcast %cst_18 : f32 to vector<1x256xf32>
    %48 = arith.mulf %46, %47 : vector<1x256xf32>
    %49 = arith.mulf %44, %44 : vector<16x256xf32>
    %cst_19 = arith.constant dense<0.000000e+00> : vector<256xf32>
    %50 = vector.multi_reduction <add>, %49, %cst_19 [0] : vector<16x256xf32> to vector<256xf32>
    %51 = vector.shape_cast %50 : vector<256xf32> to vector<1x256xf32>
    %cst_20 = arith.constant 1.000000e-01 : f32
    %52 = vector.broadcast %cst_20 : f32 to vector<1x256xf32>
    %53 = arith.mulf %51, %52 : vector<1x256xf32>
    %54 = arith.mulf %48, %48 : vector<1x256xf32>
    %55 = arith.subf %53, %54 : vector<1x256xf32>
    %cst_21 = arith.constant 0.000000e+00 : f32
    %56 = vector.broadcast %cst_21 : f32 to vector<1x256xf32>
    %57 = arith.maximumf %55, %56 : vector<1x256xf32>
    %58 = vector.broadcast %48 : vector<1x256xf32> to vector<16x256xf32>
    %59 = arith.subf %42, %58 : vector<16x256xf32>
    %cst_22 = arith.constant 1.000000e-07 : f32
    %60 = vector.broadcast %cst_22 : f32 to vector<1x256xf32>
    %61 = arith.addf %57, %60 : vector<1x256xf32>
    %62 = math.rsqrt %61 : vector<1x256xf32>
    %63 = vector.broadcast %62 : vector<1x256xf32> to vector<16x256xf32>
    %64 = arith.mulf %59, %63 : vector<16x256xf32>
    %65 = arith.truncf %64 : vector<16x256xf32> to vector<16x256xbf16>
    %c2 = arith.constant 2 : index
    %c0_23 = arith.constant 0 : index
    %66 = vector.load %arg5[%c2, %c0_23] : memref<4x256xf32, #tpu.memory_space<vmem>>, vector<1x256xf32>
    %c0_24 = arith.constant 0 : index
    %c0_25 = arith.constant 0 : index
    %67 = vector.load %arg3[%c0_24, %c0_25] : memref<256x256xbf16, #tpu.memory_space<vmem>>, vector<256x256xbf16>
    %cst_26 = arith.constant dense<0.000000e+00> : vector<16x256xf32>
    %68 = tpu.matmul %65, %67, %cst_26 {dimension_numbers = #tpu.dot_dimension_numbers<[1], [0], [0], [1], [0, 0, 1, 1], [], []>} : vector<16x256xbf16>, vector<256x256xbf16>, vector<16x256xf32> -> vector<16x256xf32>
    %69 = vector.broadcast %66 : vector<1x256xf32> to vector<16x256xf32>
    %70 = arith.addf %68, %69 : vector<16x256xf32>
    %cst_27 = arith.constant 0.000000e+00 : f32
    %71 = vector.broadcast %cst_27 : f32 to vector<16x256xf32>
    %72 = arith.maximumf %70, %71 : vector<16x256xf32>
    %73 = vector.broadcast %4 : vector<16x1xf32> to vector<16x256xf32>
    %74 = arith.mulf %72, %73 : vector<16x256xf32>
    %cst_28 = arith.constant dense<0.000000e+00> : vector<256xf32>
    %75 = vector.multi_reduction <add>, %74, %cst_28 [0] : vector<16x256xf32> to vector<256xf32>
    %76 = vector.shape_cast %75 : vector<256xf32> to vector<1x256xf32>
    %cst_29 = arith.constant 1.000000e-01 : f32
    %77 = vector.broadcast %cst_29 : f32 to vector<1x256xf32>
    %78 = arith.mulf %76, %77 : vector<1x256xf32>
    %79 = arith.mulf %74, %74 : vector<16x256xf32>
    %cst_30 = arith.constant dense<0.000000e+00> : vector<256xf32>
    %80 = vector.multi_reduction <add>, %79, %cst_30 [0] : vector<16x256xf32> to vector<256xf32>
    %81 = vector.shape_cast %80 : vector<256xf32> to vector<1x256xf32>
    %cst_31 = arith.constant 1.000000e-01 : f32
    %82 = vector.broadcast %cst_31 : f32 to vector<1x256xf32>
    %83 = arith.mulf %81, %82 : vector<1x256xf32>
    %84 = arith.mulf %78, %78 : vector<1x256xf32>
    %85 = arith.subf %83, %84 : vector<1x256xf32>
    %cst_32 = arith.constant 0.000000e+00 : f32
    %86 = vector.broadcast %cst_32 : f32 to vector<1x256xf32>
    %87 = arith.maximumf %85, %86 : vector<1x256xf32>
    %88 = vector.broadcast %78 : vector<1x256xf32> to vector<16x256xf32>
    %89 = arith.subf %72, %88 : vector<16x256xf32>
    %cst_33 = arith.constant 1.000000e-07 : f32
    %90 = vector.broadcast %cst_33 : f32 to vector<1x256xf32>
    %91 = arith.addf %87, %90 : vector<1x256xf32>
    %92 = math.rsqrt %91 : vector<1x256xf32>
    %93 = vector.broadcast %92 : vector<1x256xf32> to vector<16x256xf32>
    %94 = arith.mulf %89, %93 : vector<16x256xf32>
    %95 = arith.truncf %94 : vector<16x256xf32> to vector<16x256xbf16>
    %c3 = arith.constant 3 : index
    %c0_34 = arith.constant 0 : index
    %96 = vector.load %arg5[%c3, %c0_34] : memref<4x256xf32, #tpu.memory_space<vmem>>, vector<1x128xf32>
    %c0_35 = arith.constant 0 : index
    %c0_36 = arith.constant 0 : index
    %97 = vector.load %arg4[%c0_35, %c0_36] : memref<256x128xbf16, #tpu.memory_space<vmem>>, vector<256x128xbf16>
    %cst_37 = arith.constant dense<0.000000e+00> : vector<16x128xf32>
    %98 = tpu.matmul %95, %97, %cst_37 {dimension_numbers = #tpu.dot_dimension_numbers<[1], [0], [0], [1], [0, 0, 1, 1], [], []>} : vector<16x256xbf16>, vector<256x128xbf16>, vector<16x128xf32> -> vector<16x128xf32>
    %99 = vector.broadcast %96 : vector<1x128xf32> to vector<16x128xf32>
    %100 = arith.addf %98, %99 : vector<16x128xf32>
    %101 = vector.extract_strided_slice %100 {offsets = [0, 0], sizes = [16, 4], strides = [1, 1]} : vector<16x128xf32> to vector<16x4xf32>
    %cst_38 = arith.constant 2.000000e+01 : f32
    %102 = vector.broadcast %cst_38 : f32 to vector<16x4xf32>
    %103 = arith.cmpf ogt, %101, %102 : vector<16x4xf32>
    %cst_39 = arith.constant 2.000000e+01 : f32
    %104 = vector.broadcast %cst_39 : f32 to vector<16x4xf32>
    %105 = arith.minimumf %101, %104 : vector<16x4xf32>
    %106 = math.exp %105 : vector<16x4xf32>
    %107 = math.log1p %106 : vector<16x4xf32>
    %108 = arith.select %103, %101, %107 : vector<16x4xi1>, vector<16x4xf32>
    %c0_40 = arith.constant 0 : index
    %c0_41 = arith.constant 0 : index
    %109 = vector.load %arg6[%c0_40, %c0_41] : memref<16x4xf32, #tpu.memory_space<vmem>>, vector<16x4xf32>
    tpu.vector_store %arg6[%c0_40, %c0_41], %108 {strides = array<i32>} : memref<16x4xf32, #tpu.memory_space<vmem>>, vector<16x4xf32>,
    return
  }
}

</mosaic_0001>

<bundles_post_ra>
// kernel: tpu_custom_call.1
= control target key start
LH: loop header
LB: loop body
LE: loop exit
PB: predicated region body
PF: predicated region fallthrough
CT: control target
= control target key end

     0   :  { %11 = vsyncpa [#allocation3], 0  ;;  %s1565_s0 = inlined_call_operand.hbm [shape: bf16[16,32], index: 0, kind: input, shape index: {}]   ;;  %s1566_s1 = inlined_call_operand.hbm [shape: bf16[32,256], index: 1, kind: input, shape index: {}]   ;;  %s1567_s2 = inlined_call_operand.hbm [shape: bf16[256,256], index: 2, kind: input, shape index: {}]   ;;  %s1568_s3 = inlined_call_operand.hbm [shape: bf16[256,256], index: 3, kind: input, shape index: {}]   ;;  %s1569_s4 = inlined_call_operand.hbm [shape: bf16[256,128], index: 4, kind: input, shape index: {}]   ;;  %s1570_s5 = inlined_call_operand.vmem [shape: f32[4,256], index: 5, kind: input, shape index: {}]   ;;  %s1571_s6 = inlined_call_operand.vmem [shape: f32[16,4], index: 6, kind: output, shape index: {}]  }
   0x1   :  { %12 = vsyncpa [#allocation5], 0 }
   0x2   :  { %13 = vsyncpa [#allocation8], 0  ;;  %s1459_s21 = smov [#allocation4]  }
   0x3   :  { %s31_s22 = sshll.u32 %s1459_s21, 4  ;;  %s32_s22 = int_to_ptr.vmem [resolvable:$true] %s31_s22 }
   0x4   :  { %s1361_s23 = scalar_lea.vmem %s32_s22, 512  ;;  %p1366_p1 = scmp.lt.s32.totalorder %s32_s22, %s32_s22 }
   0x5   :  { %p1362_p0 = scmp.ne.s32.totalorder %s32_s22, %s1361_s23  ;;  %p1367_p2 = scmp.lt.s32.totalorder %s1361_s23, %s1361_s23 }
   0x7   :  { %p1368_p3 = por %p1367_p2, %p1366_p1 }
   0x9   :  { %p1369_p4 = pnand %p1368_p3, %p1362_p0 }
   0xb   :  { %1372 = shalt.err (!%p1369_p4)
}
   0xc   :  { %s1460_s24 = smov 128   ;;  %s1461_s25 = smov 8  }
   0xd   :  { %37 = dma.hbm_to_vmem [thread:$0]  %s1566_s1, 512, %s32_s22, [#allocation5], %s1460_s24, %s1460_s24, %s1461_s25  }
   0xe   :  { %s1462_s28 = smov [#allocation7]   ;;  %s1463_s30 = smov [#allocation2]  }
   0xf   :  { %s55_s29 = sshll.u32 %s1462_s28, 4  ;;  %s19_s7 = sshll.u32 %s1463_s30, 4  ;;  %s56_s29 = int_to_ptr.vmem [resolvable:$true] %s55_s29  ;;  %s20_s7 = int_to_ptr.vmem [resolvable:$true] %s19_s7 }
  0x10   :  { %s1381_s8 = scalar_lea.vmem %s56_s29, 4096  ;;  %p1386_p6 = scmp.lt.s32.totalorder %s56_s29, %s56_s29 }
  0x11   :  { %p1382_p5 = scmp.ne.s32.totalorder %s56_s29, %s1381_s8  ;;  %p1387_p7 = scmp.lt.s32.totalorder %s1381_s8, %s1381_s8 }
  0x13   :  { %p1388_p8 = por %p1387_p7, %p1386_p6 }
  0x15   :  { %p1389_p9 = pnand %p1388_p8, %p1382_p5 }
  0x17   :  { %1392 = shalt.err (!%p1389_p9)
}
  0x18   :  { %61 = dma.hbm_to_vmem [thread:$0]  %s1568_s3, 4096, %s56_s29, [#allocation8], %s1460_s24, %s1460_s24, %s1461_s25  }
  0x19   :  { %s1401_s1 = scalar_lea.vmem %s20_s7, 128  ;;  %p1406_p11 = scmp.lt.s32.totalorder %s20_s7, %s20_s7 }
  0x1a   :  { %p1402_p10 = scmp.ne.s32.totalorder %s20_s7, %s1401_s1  ;;  %p1407_p12 = scmp.lt.s32.totalorder %s1401_s1, %s1401_s1 }
  0x1c   :  { %p1408_p13 = por %p1407_p12, %p1406_p11 }
  0x1e   :  { %p1409_p0 = pnand %p1408_p13, %p1402_p10 }
  0x20   :  { %1412 = shalt.err (!%p1409_p0)
}
  0x21   :  { %s1464_s11 = smov 64   ;;  %s1465_s12 = smov 4  }
  0x22   :  { %25 = dma.hbm_to_vmem [thread:$0]  %s1565_s0, 128, %s20_s7, [#allocation3], %s1464_s11, %s1464_s11, %s1465_s12  }
  0x23   :  { %s1466_s15 = smov [#allocation6]   ;;  %s1467_s17 = smov [#allocation9]  }
  0x24   :  { %s43_s16 = sshll.u32 %s1466_s15, 4  ;;  %s67_s18 = sshll.u32 %s1467_s17, 4  ;;  %s44_s16 = int_to_ptr.vmem [resolvable:$true] %s43_s16  ;;  %s68_s18 = int_to_ptr.vmem [resolvable:$true] %s67_s18 }
  0x25   :  { %s1421_s3 = scalar_lea.vmem %s44_s16, 4096  ;;  %p1426_p2 = scmp.lt.s32.totalorder %s44_s16, %s44_s16 }
  0x26   :  { %p1422_p1 = scmp.ne.s32.totalorder %s44_s16, %s1421_s3  ;;  %p1427_p3 = scmp.lt.s32.totalorder %s1421_s3, %s1421_s3 }
  0x28   :  { %p1428_p4 = por %p1427_p3, %p1426_p2 }
  0x2a   :  { %p1429_p5 = pnand %p1428_p4, %p1422_p1 }
  0x2c   :  { %1432 = shalt.err (!%p1429_p5)
}
  0x2d   :  { %49 = dma.hbm_to_vmem [thread:$0]  %s1567_s2, 4096, %s44_s16, [#allocation5], %s1460_s24, %s1460_s24, %s1461_s25  }
  0x2e   :  { %s1441_s0 = scalar_lea.vmem %s68_s18, 2048  ;;  %p1446_p7 = scmp.lt.s32.totalorder %s68_s18, %s68_s18 }
  0x2f   :  { %p1442_p6 = scmp.ne.s32.totalorder %s68_s18, %s1441_s0  ;;  %p1447_p8 = scmp.lt.s32.totalorder %s1441_s0, %s1441_s0 }
  0x31   :  { %p1448_p9 = por %p1447_p8, %p1446_p7 }
  0x33   :  { %p1449_p10 = pnand %p1448_p9, %p1442_p6 }
  0x35   :  { %1452 = shalt.err (!%p1449_p10)
}
  0x36   :  { %73 = dma.hbm_to_vmem [thread:$0]  %s1569_s4, 2048, %s68_s18, [#allocation8], %s1464_s11, %s1464_s11, %s1465_s12  }
  0x37   :  { %1453 = dma.done.wait [#allocation3], 128  }
  0x38   :  { %1454 = vsyncadd [#allocation3], 4294967168 }
  0x39   :  { %1455 = dma.done.wait [#allocation5], 4608  }
  0x3a   :  { %1456 = vsyncadd [#allocation5], 4294962688 }
  0x3b   :  { %1457 = dma.done.wait [#allocation8], 6144  }
  0x3c   :  { %1458 = vsyncadd [#allocation8], 4294961152  ;;  %v1468_v0 = vmov 0   ;;  %v1214_v1 = vld [vmem:[#allocation4 + $0x14] ss:$8 sps:$4 sm:$0xff]   ;;  %vm144_vm0 = vcmask 261120   ;;  %v92_v42 = vlaneseq }
  0x3d   :  { %180 = vmatprep.mubr.bf16.mxu0 %v1468_v0  ;;  %v1216_v2 = vld [vmem:[#allocation4 + $0x10] ss:$8 sps:$4 sm:$0xff]   ;;  %160 = vmatprep.subr.bf16.mxu0 %v1214_v1  ;;  %v1217_v3 = vld [vmem:[#allocation4 + $0x4] ss:$8 sps:$4 sm:$0xff]   ;;  %v1219_v4 = vld [vmem:[#allocation4] ss:$8 sps:$4 sm:$0xff]  }
  0x3e   :  { %161 = vmatpush1.bf16.msra.mxu0 %v1216_v2  ;;  %v1221_v5 = vld [vmem:[#allocation6 + $0x74] ss:$8 sps:$4 sm:$0xff]   ;;  %v1223_v6 = vld [vmem:[#allocation6 + $0x70] ss:$8 sps:$4 sm:$0xff]   ;;  %v1224_v7 = vld [vmem:[#allocation6 + $0x64] ss:$8 sps:$4 sm:$0xff]  }
  0x3f   :  { %162 = vmatprep.subr.bf16.mxu0 %v1217_v3  ;;  %v1220_v8 = vld [vmem:[#allocation2] sm:$0xff]   ;;  %460 = vmatprep.subr.bf16.mxu1 %v1221_v5  ;;  %v1226_v9 = vld [vmem:[#allocation6 + $0x60] ss:$8 sps:$4 sm:$0xff]   ;;  %v1230_v12 = vld [vmem:[#allocation6 + $0x44] ss:$8 sps:$4 sm:$0xff]   ;;  %v93_v43 = vshrl.u32 %v92_v42, 7 }
  0x40   :  { %461 = vmatpush1.bf16.msra.mxu1 %v1223_v6  ;;  %v1227_v10 = vld [vmem:[#allocation6 + $0x54] ss:$8 sps:$4 sm:$0xff]   ;;  %v1229_v11 = vld [vmem:[#allocation6 + $0x50] ss:$8 sps:$4 sm:$0xff]   ;;  %v1232_v13 = vld [vmem:[#allocation6 + $0x40] ss:$8 sps:$4 sm:$0xff]  }
  0x41   :  { %462 = vmatprep.subr.bf16.mxu1 %v1224_v7  ;;  %v1233_v14 = vld [vmem:[#allocation6 + $0x34] ss:$8 sps:$4 sm:$0xff]   ;;  %v1235_v15 = vld [vmem:[#allocation6 + $0x30] ss:$8 sps:$4 sm:$0xff]   ;;  %v1236_v16 = vld [vmem:[#allocation6 + $0x24] ss:$8 sps:$4 sm:$0xff]  }
  0x42   :  { %163 = vmatpush1.bf16.msra.mxu0 %v1219_v4  ;;  %v1238_v17 = vld [vmem:[#allocation6 + $0x20] ss:$8 sps:$4 sm:$0xff]   ;;  %v1239_v18 = vld [vmem:[#allocation6 + $0x14] ss:$8 sps:$4 sm:$0xff]   ;;  %v1241_v19 = vld [vmem:[#allocation6 + $0x10] ss:$8 sps:$4 sm:$0xff]  }
  0x43   :  { %v1242_v20 = vld [vmem:[#allocation6 + $0x4] ss:$8 sps:$4 sm:$0xff]   ;;  %v1244_v21 = vld [vmem:[#allocation6] ss:$8 sps:$4 sm:$0xff]   ;;  %v1245_v22 = vld [vmem:[#allocation6 + $0xf4] ss:$8 sps:$4 sm:$0xff]  }
  0x44   :  { %463 = vmatpush1.bf16.msra.mxu1 %v1226_v9  ;;  %v1247_v23 = vld [vmem:[#allocation6 + $0xf0] ss:$8 sps:$4 sm:$0xff]   ;;  %v1248_v24 = vld [vmem:[#allocation6 + $0xe4] ss:$8 sps:$4 sm:$0xff]   ;;  %v1250_v25 = vld [vmem:[#allocation6 + $0xe0] ss:$8 sps:$4 sm:$0xff]  }
  0x45   :  { %1097 = vmatmul.mubr.msk.bf16.vlgmr.msra.gmra.mxu0 %vm144_vm0, %v1220_v8  ;;  %464 = vmatprep.subr.bf16.mxu1 %v1227_v10  ;;  %v1251_v26 = vld [vmem:[#allocation6 + $0xd4] ss:$8 sps:$4 sm:$0xff]   ;;  %v1253_v27 = vld [vmem:[#allocation6 + $0xd0] ss:$8 sps:$4 sm:$0xff]   ;;  %v1254_v28 = vld [vmem:[#allocation6 + $0xc4] ss:$8 sps:$4 sm:$0xff]  }
  0x46   :  { %v1256_v29 = vld [vmem:[#allocation6 + $0xc0] ss:$8 sps:$4 sm:$0xff]   ;;  %v1257_v30 = vld [vmem:[#allocation6 + $0xb4] ss:$8 sps:$4 sm:$0xff]   ;;  %v1259_v31 = vld [vmem:[#allocation6 + $0xb0] ss:$8 sps:$4 sm:$0xff]  }
  0x47   :  { %v1260_v32 = vld [vmem:[#allocation6 + $0xa4] ss:$8 sps:$4 sm:$0xff]   ;;  %v1262_v33 = vld [vmem:[#allocation6 + $0xa0] ss:$8 sps:$4 sm:$0xff]   ;;  %v1263_v34 = vld [vmem:[#allocation6 + $0x94] ss:$8 sps:$4 sm:$0xff]  }
  0x48   :  { %465 = vmatpush1.bf16.msra.mxu1 %v1229_v11  ;;  %v1265_v35 = vld [vmem:[#allocation6 + $0x90] ss:$8 sps:$4 sm:$0xff]   ;;  %v1266_v36 = vld [vmem:[#allocation6 + $0x84] ss:$8 sps:$4 sm:$0xff]   ;;  %v1268_v37 = vld [vmem:[#allocation6 + $0x80] ss:$8 sps:$4 sm:$0xff]  }
  0x49   :  { %466 = vmatprep.subr.bf16.mxu1 %v1230_v12  ;;  %v1269_v38 = vld [vmem:[#allocation7 + $0x70] ss:$8 sps:$4 sm:$0xff]   ;;  %v1271_v39 = vld [vmem:[#allocation7 + $0x74] ss:$8 sps:$4 sm:$0xff]   ;;  %v1274_v40 = vld [vmem:[#allocation7 + $0x64] ss:$8 sps:$4 sm:$0xff]  }
  0x4a   :  { %772 = vmatprep.subr.bf16.mxu0 %v1271_v39  ;;  %v1272_v41 = vld [vmem:[#allocation7 + $0x60] ss:$8 sps:$4 sm:$0xff]   ;;  %v1529_v44 = vsub.s32 0, %v93_v43  ;;  %v103_v45 = vld [vmem:[%s1570_s5] ss:$4 sm:$0x3] }
  0x4b   :  { %773 = vmatpush1.bf16.msra.mxu0 %v1269_v38  ;;  %v1534_v46 = vsub.s32 1, %v93_v43  ;;  %v94_v48 = vadd.s32 8, %v93_v43  ;;  %v1469_v56 = vmov 0.0   ;;  %vm1081_vm3 = vcmask 31744  }
  0x4c   :  { %467 = vmatpush1.bf16.msra.mxu1 %v1232_v13  ;;  %774 = vmatprep.subr.bf16.mxu0 %v1274_v40  ;;  %v112_v47 = vrot.slane %v103_v45, %v1529_v44 }
  0x4d   :  { %468 = vmatprep.subr.bf16.mxu1 %v1233_v14  ;;  %v116_v50 = vrot.slane %v103_v45, %v1534_v46  ;;  %vm96_vm1 = vcmp.lt.s32.totalorder %v94_v48, 10 }
  0x4e   :  { %v1538_v57 = vsel %vm96_vm1, 1.0, %v1469_v56 }
  0x4f   :  { %775 = vmatpush1.bf16.msra.mxu0 %v1272_v41 }
  0x50   :  { %469 = vmatpush1.bf16.msra.mxu1 %v1235_v15 }
  0x51   :  { %470 = vmatprep.subr.bf16.mxu1 %v1236_v16 }
  0x54   :  { %471 = vmatpush1.bf16.msra.mxu1 %v1238_v17 }
  0x55   :  { %472 = vmatprep.subr.bf16.mxu1 %v1239_v18 }
  0x58   :  { %473 = vmatpush1.bf16.msra.mxu1 %v1241_v19 }
  0x59   :  { %474 = vmatprep.subr.bf16.mxu1 %v1242_v20 }
  0x5c   :  { %475 = vmatpush1.bf16.msra.mxu1 %v1244_v21 }
  0x5d   :  { %476 = vmatprep.subr.bf16.mxu1 %v1245_v22 }
  0x60   :  { %477 = vmatpush2.bf16.msra.mxu1 %v1247_v23 }
  0x61   :  { %478 = vmatprep.subr.bf16.mxu1 %v1248_v24 }
  0x64   :  { %479 = vmatpush2.bf16.msra.mxu1 %v1250_v25 }
  0x65   :  { %480 = vmatprep.subr.bf16.mxu1 %v1251_v26 }
  0x68   :  { %481 = vmatpush2.bf16.msra.mxu1 %v1253_v27 }
  0x69   :  { %482 = vmatprep.subr.bf16.mxu1 %v1254_v28 }
  0x6c   :  { %483 = vmatpush2.bf16.msra.mxu1 %v1256_v29 }
  0x6d   :  { %484 = vmatprep.subr.bf16.mxu1 %v1257_v30 }
  0x70   :  { %485 = vmatpush2.bf16.msra.mxu1 %v1259_v31 }
  0x71   :  { %486 = vmatprep.subr.bf16.mxu1 %v1260_v32 }
  0x74   :  { %487 = vmatpush2.bf16.msra.mxu1 %v1262_v33 }
  0x75   :  { %488 = vmatprep.subr.bf16.mxu1 %v1263_v34 }
  0x78   :  { %489 = vmatpush2.bf16.msra.mxu1 %v1265_v35 }
  0x79   :  { %490 = vmatprep.subr.bf16.mxu1 %v1266_v36 }
  0x7c   :  { %491 = vmatpush2.bf16.msra.mxu1 %v1268_v37 }
 0x105   :  { %v182_v49 = vpop.f32.mrf.mxu0 }
 0x106   :  { %v183_v52 = vadd.f32 %v182_v49, %v112_v47 }
 0x107   :  { %v184_v51 = vpop.f32.mrf.mxu0 }
 0x108   :  { %v185_v53 = vadd.f32 %v184_v51, %v116_v50  ;;  %v191_v59 = vmax.f32 %v183_v52, 0.0 }
 0x109   :  { %v186_v54 = vpop.f32.mrf.mxu0 }
 0x10a   :  { %v187_v55 = vadd.f32 %v186_v54, %v112_v47  ;;  %v192_v62 = vmax.f32 %v185_v53, 0.0  ;;  %v215_v1 = vmul.f32 %v191_v59, %v191_v59 }
 0x10b   :  { %v188_v58 = vpop.f32.mrf.mxu0 }
 0x10c   :  { %v193_v60 = vmax.f32 %v187_v55, 0.0  ;;  %v189_v61 = vadd.f32 %v188_v58, %v116_v50  ;;  %v216_v5 = vmul.f32 %v192_v62, %v192_v62 }
 0x10e   :  { %v197_v63 = vmul.f32 %v1538_v57, %v193_v60  ;;  %v194_v0 = vmax.f32 %v189_v61, 0.0 }
 0x110   :  { %v199_v2 = vadd.f32 %v197_v63, %v191_v59  ;;  %v217_v3 = vmul.f32 %v197_v63, %v197_v63  ;;  %v198_v4 = vmul.f32 %v1538_v57, %v194_v0 }
 0x112   :  { %v200_v6 = vrot.slane %v199_v2, 4  ;;  %v219_v7 = vadd.f32 %v217_v3, %v215_v1  ;;  %v206_v8 = vadd.f32 %v198_v4, %v192_v62  ;;  %v218_v9 = vmul.f32 %v198_v4, %v198_v4  ;;  %v1277_v1 = vld [vmem:[#allocation7 + $0x54] ss:$8 sps:$4 sm:$0xff]   ;;  %v1280_v3 = vld [vmem:[#allocation7 + $0x44] ss:$8 sps:$4 sm:$0xff]  }
 0x113   :  { %776 = vmatprep.subr.bf16.mxu0 %v1277_v1  ;;  %v1278_v4 = vld [vmem:[#allocation7 + $0x40] ss:$8 sps:$4 sm:$0xff]  }
 0x114   :  { %v201_v10 = vadd.f32 %v200_v6, %v199_v2  ;;  %v220_v11 = vrot.slane %v219_v7, 4  ;;  %v207_v12 = vrot.slane %v206_v8, 4  ;;  %v226_v13 = vadd.f32 %v218_v9, %v216_v5  ;;  %v1275_v2 = vld [vmem:[#allocation7 + $0x50] ss:$8 sps:$4 sm:$0xff]   ;;  %v1289_v5 = vld [vmem:[#allocation7 + $0x14] ss:$8 sps:$4 sm:$0xff]  }
 0x115   :  { %777 = vmatpush1.bf16.msra.mxu0 %v1275_v2  ;;  %v1287_v6 = vld [vmem:[#allocation7 + $0x10] ss:$8 sps:$4 sm:$0xff]   ;;  %v1295_v9 = vld [vmem:[#allocation7 + $0xf4] ss:$8 sps:$4 sm:$0xff]  }
 0x116   :  { %v202_v14 = vrot.slane %v201_v10, 2  ;;  %v221_v15 = vadd.f32 %v220_v11, %v219_v7  ;;  %v208_v16 = vadd.f32 %v207_v12, %v206_v8  ;;  %v227_v17 = vrot.slane %v226_v13, 4  ;;  %778 = vmatprep.subr.bf16.mxu0 %v1280_v3  ;;  %v1292_v7 = vld [vmem:[#allocation7 + $0x4] ss:$8 sps:$4 sm:$0xff]   ;;  %v1290_v8 = vld [vmem:[#allocation7] ss:$8 sps:$4 sm:$0xff]  }
 0x117   :  { %v1298_v11 = vld [vmem:[#allocation7 + $0xe4] ss:$8 sps:$4 sm:$0xff]   ;;  %v1296_v12 = vld [vmem:[#allocation7 + $0xe0] ss:$8 sps:$4 sm:$0xff]  }
 0x118   :  { %v203_v18 = vadd.f32 %v202_v14, %v201_v10  ;;  %v222_v19 = vrot.slane %v221_v15, 2  ;;  %v209_v20 = vrot.slane %v208_v16, 2  ;;  %v228_v21 = vadd.f32 %v227_v17, %v226_v13  ;;  %v1293_v10 = vld [vmem:[#allocation7 + $0xf0] ss:$8 sps:$4 sm:$0xff]   ;;  %v1301_v13 = vld [vmem:[#allocation7 + $0xd4] ss:$8 sps:$4 sm:$0xff]  }
 0x119   :  { %779 = vmatpush1.bf16.msra.mxu0 %v1278_v4  ;;  %v1299_v14 = vld [vmem:[#allocation7 + $0xd0] ss:$8 sps:$4 sm:$0xff]   ;;  %v1307_v17 = vld [vmem:[#allocation7 + $0xb4] ss:$8 sps:$4 sm:$0xff]  }
 0x11a   :  { %v204_v22 = vrot.slane %v203_v18, 1  ;;  %v223_v23 = vadd.f32 %v222_v19, %v221_v15  ;;  %v210_v24 = vadd.f32 %v209_v20, %v208_v16  ;;  %v229_v25 = vrot.slane %v228_v21, 2  ;;  %v1304_v15 = vld [vmem:[#allocation7 + $0xc4] ss:$8 sps:$4 sm:$0xff]   ;;  %v1302_v16 = vld [vmem:[#allocation7 + $0xc0] ss:$8 sps:$4 sm:$0xff]  }
 0x11b   :  { %v1310_v19 = vld [vmem:[#allocation7 + $0xa4] ss:$8 sps:$4 sm:$0xff]   ;;  %v1308_v20 = vld [vmem:[#allocation7 + $0xa0] ss:$8 sps:$4 sm:$0xff]  }
 0x11c   :  { %v205_v26 = vadd.f32 %v204_v22, %v203_v18  ;;  %v224_v27 = vrot.slane %v223_v23, 1  ;;  %v211_v28 = vrot.slane %v210_v24, 1  ;;  %v230_v29 = vadd.f32 %v229_v25, %v228_v21  ;;  %v1305_v18 = vld [vmem:[#allocation7 + $0xb0] ss:$8 sps:$4 sm:$0xff]   ;;  %v1313_v21 = vld [vmem:[#allocation7 + $0x94] ss:$8 sps:$4 sm:$0xff]  }
 0x11d   :  { %v1311_v22 = vld [vmem:[#allocation7 + $0x90] ss:$8 sps:$4 sm:$0xff]  }
 0x11e   :  { %v213_v30 = vmul.f32 0.1, %v205_v26  ;;  %v225_v31 = vadd.f32 %v224_v27, %v223_v23  ;;  %v212_v32 = vadd.f32 %v211_v28, %v210_v24  ;;  %v231_v33 = vrot.slane %v230_v29, 1  ;;  %v1316_v23 = vld [vmem:[#allocation7 + $0x84] ss:$8 sps:$4 sm:$0xff]  }
 0x11f   :  { %v1314_v24 = vld [vmem:[#allocation7 + $0x80] ss:$8 sps:$4 sm:$0xff]   ;;  %v1098_v25 = vld [vmem:[%s1570_s5 + $0x1] ss:$4 sm:$0x3] }
 0x120   :  { %v233_v34 = vmul.f32 0.1, %v225_v31  ;;  %v235_v35 = vmul.f32 %v213_v30, %v213_v30  ;;  %v214_v36 = vmul.f32 0.1, %v212_v32  ;;  %v232_v37 = vadd.f32 %v231_v33, %v230_v29 }
 0x121   :  { %v243_v49 = vsub.f32 %v193_v60, %v213_v30  ;;  %v241_v50 = vsub.f32 %v191_v59, %v213_v30  ;;  %v1283_v59 = vld [vmem:[#allocation7 + $0x34] ss:$8 sps:$4 sm:$0xff]   ;;  %v1281_v60 = vld [vmem:[#allocation7 + $0x30] ss:$8 sps:$4 sm:$0xff]   ;;  %v293_v26 = vrot.slane %v1098_v25, %v1529_v44  ;;  %v297_v28 = vrot.slane %v1098_v25, %v1534_v46 }
 0x122   :  { %v237_v38 = vsub.f32 %v233_v34, %v235_v35  ;;  %v236_v39 = vmul.f32 %v214_v36, %v214_v36  ;;  %v234_v40 = vmul.f32 0.1, %v232_v37  ;;  %v244_v51 = vsub.f32 %v194_v0, %v214_v36  ;;  %780 = vmatprep.subr.bf16.mxu0 %v1283_v59  ;;  %v1284_v0 = vld [vmem:[#allocation7 + $0x20] ss:$8 sps:$4 sm:$0xff]  }
 0x123   :  { %v242_v52 = vsub.f32 %v192_v62, %v214_v36  ;;  %781 = vmatpush1.bf16.msra.mxu0 %v1281_v60  ;;  %v1286_v62 = vld [vmem:[#allocation7 + $0x24] ss:$8 sps:$4 sm:$0xff]  }
 0x124   :  { %v239_v41 = vmax.f32 %v237_v38, 0.0  ;;  %v238_v42 = vsub.f32 %v234_v40, %v236_v39  ;;  %782 = vmatprep.subr.bf16.mxu0 %v1286_v62 }
 0x126   :  { %v245_v43 = vadd.f32 1e-07, %v239_v41  ;;  %v240_v45 = vmax.f32 %v238_v42, 0.0 }
 0x127   :  { %783 = vmatpush1.bf16.msra.mxu0 %v1284_v0 }
 0x128   :  { %1333 = vrsqrt.f32 %v245_v43  ;;  %v246_v47 = vadd.f32 1e-07, %v240_v45  ;;  %784 = vmatprep.subr.bf16.mxu0 %v1289_v5 }
 0x12a   :  { %1335 = vrsqrt.f32 %v246_v47 }
 0x12b   :  { %785 = vmatpush1.bf16.msra.mxu0 %v1287_v6 }
 0x12c   :  { %786 = vmatprep.subr.bf16.mxu0 %v1292_v7 }
 0x12f   :  { %787 = vmatpush1.bf16.msra.mxu0 %v1290_v8 }
 0x130   :  { %788 = vmatprep.subr.bf16.mxu0 %v1295_v9 }
 0x133   :  { %789 = vmatpush2.bf16.msra.mxu0 %v1293_v10 }
 0x134   :  { %790 = vmatprep.subr.bf16.mxu0 %v1298_v11 }
 0x135   :  { %v1334_v48 = vpop.eup %1333 }
 0x136   :  { %v251_v54 = vmul.f32 %v1334_v48, %v243_v49  ;;  %v249_v55 = vmul.f32 %v1334_v48, %v241_v50 }
 0x137   :  { %v1336_v53 = vpop.eup %1335  ;;  %791 = vmatpush2.bf16.msra.mxu0 %v1296_v12 }
 0x138   :  { %v250_v56 = vmul.f32 %v1336_v53, %v242_v52  ;;  %v252_v58 = vmul.f32 %v1336_v53, %v244_v51  ;;  %v253_v63 = vpack.c.bf16 %v251_v54, %v249_v55  ;;  %792 = vmatprep.subr.bf16.mxu0 %v1301_v13 }
 0x13a   :  { %v254_v61 = vpack.c.bf16 %v252_v58, %v250_v56 }
 0x13b   :  { %793 = vmatpush2.bf16.msra.mxu0 %v1299_v14 }
 0x13c   :  { %492 = vmatprep.mubr.bf16.mxu1 %v254_v61  ;;  %794 = vmatprep.subr.bf16.mxu0 %v1304_v15 }
 0x13d   :  { %493 = vmatmul.mubr.bf16.vlgmr.msra.gmra.mxu1 %v253_v63 }
 0x13f   :  { %795 = vmatpush2.bf16.msra.mxu0 %v1302_v16 }
 0x140   :  { %796 = vmatprep.subr.bf16.mxu0 %v1307_v17 }
 0x143   :  { %797 = vmatpush2.bf16.msra.mxu0 %v1305_v18 }
 0x144   :  { %798 = vmatprep.subr.bf16.mxu0 %v1310_v19 }
 0x147   :  { %799 = vmatpush2.bf16.msra.mxu0 %v1308_v20 }
 0x148   :  { %800 = vmatprep.subr.bf16.mxu0 %v1313_v21 }
 0x14b   :  { %801 = vmatpush2.bf16.msra.mxu0 %v1311_v22 }
 0x14c   :  { %802 = vmatprep.subr.bf16.mxu0 %v1316_v23 }
 0x14f   :  { %803 = vmatpush2.bf16.msra.mxu0 %v1314_v24 }
 0x1fd   :  { %v494_v27 = vpop.f32.mrf.mxu1 }
 0x1fe   :  { %v495_v30 = vadd.f32 %v494_v27, %v293_v26 }
 0x1ff   :  { %v496_v29 = vpop.f32.mrf.mxu1 }
 0x200   :  { %v497_v31 = vadd.f32 %v496_v29, %v297_v28  ;;  %v503_v35 = vmax.f32 %v495_v30, 0.0 }
 0x201   :  { %v498_v32 = vpop.f32.mrf.mxu1 }
 0x202   :  { %v499_v33 = vadd.f32 %v498_v32, %v293_v26  ;;  %v504_v38 = vmax.f32 %v497_v31, 0.0  ;;  %v527_v41 = vmul.f32 %v503_v35, %v503_v35 }
 0x203   :  { %v500_v34 = vpop.f32.mrf.mxu1 }
 0x204   :  { %v505_v36 = vmax.f32 %v499_v33, 0.0  ;;  %v501_v37 = vadd.f32 %v500_v34, %v297_v28  ;;  %v528_v47 = vmul.f32 %v504_v38, %v504_v38 }
 0x206   :  { %v509_v39 = vmul.f32 %v1538_v57, %v505_v36  ;;  %v506_v40 = vmax.f32 %v501_v37, 0.0 }
 0x208   :  { %v511_v42 = vadd.f32 %v509_v39, %v503_v35  ;;  %v529_v43 = vmul.f32 %v509_v39, %v509_v39  ;;  %v510_v45 = vmul.f32 %v1538_v57, %v506_v40 }
 0x20a   :  { %v512_v48 = vrot.slane %v511_v42, 4  ;;  %v531_v49 = vadd.f32 %v529_v43, %v527_v41  ;;  %v518_v50 = vadd.f32 %v510_v45, %v504_v38  ;;  %v530_v51 = vmul.f32 %v510_v45, %v510_v45  ;;  %v1317_v41 = vld [vmem:[#allocation9 + $0x78] sm:$0xff]   ;;  %v1319_v43 = vld [vmem:[#allocation9 + $0x70] sm:$0xff]  }
 0x20b   :  { %1181 = vmatprep.subr.bf16.mxu1 %v1317_v41  ;;  %v1320_v45 = vld [vmem:[#allocation9 + $0x30] sm:$0xff]  }
 0x20c   :  { %v513_v52 = vadd.f32 %v512_v48, %v511_v42  ;;  %v532_v53 = vrot.slane %v531_v49, 4  ;;  %v519_v54 = vrot.slane %v518_v50, 4  ;;  %v538_v55 = vadd.f32 %v530_v51, %v528_v47  ;;  %v1318_v42 = vld [vmem:[#allocation9 + $0x38] sm:$0xff]   ;;  %v1329_v51 = vld [vmem:[#allocation9 + $0x48] sm:$0xff]  }
 0x20d   :  { %1182 = vmatpush3.bf16.msra.mxu1 %v1318_v42  ;;  %v1325_v47 = vld [vmem:[#allocation9 + $0x58] sm:$0xff]  }
 0x20e   :  { %v514_v56 = vrot.slane %v513_v52, 2  ;;  %v533_v58 = vadd.f32 %v532_v53, %v531_v49  ;;  %v520_v61 = vadd.f32 %v519_v54, %v518_v50  ;;  %v539_v63 = vrot.slane %v538_v55, 4  ;;  %1183 = vmatprep.subr.bf16.mxu1 %v1319_v43  ;;  %v1326_v48 = vld [vmem:[#allocation9 + $0x18] sm:$0xff]   ;;  %v1327_v49 = vld [vmem:[#allocation9 + $0x50] sm:$0xff]   ;;  %v1331_v53 = vld [vmem:[#allocation9 + $0x40] sm:$0xff]  }
 0x20f   :  { %v1328_v50 = vld [vmem:[#allocation9 + $0x10] sm:$0xff]   ;;  %v1332_v54 = vld [vmem:[#allocation9] sm:$0xff]  }
 0x210   :  { %v515_v1 = vadd.f32 %v514_v56, %v513_v52  ;;  %v534_v2 = vrot.slane %v533_v58, 2  ;;  %v521_v3 = vrot.slane %v520_v61, 2  ;;  %v540_v4 = vadd.f32 %v539_v63, %v538_v55  ;;  %v1330_v52 = vld [vmem:[#allocation9 + $0x8] sm:$0xff]   ;;  %v1131_v55 = vld [vmem:[%s1570_s5 + $0x2] ss:$4 sm:$0x3] }
 0x211   :  { %1184 = vmatpush3.bf16.msra.mxu1 %v1320_v45  ;;  %v605_v56 = vrot.slane %v1131_v55, %v1529_v44 }
 0x212   :  { %v516_v59 = vrot.slane %v515_v1, 1  ;;  %v535_v60 = vadd.f32 %v534_v2, %v533_v58  ;;  %v522_v62 = vadd.f32 %v521_v3, %v520_v61  ;;  %v541_v0 = vrot.slane %v540_v4, 2 }
 0x213   :  { %v609_v61 = vrot.slane %v1131_v55, %v1534_v46 }
 0x214   :  { %v517_v5 = vadd.f32 %v516_v59, %v515_v1  ;;  %v536_v6 = vrot.slane %v535_v60, 1  ;;  %v523_v7 = vrot.slane %v522_v62, 1  ;;  %v542_v8 = vadd.f32 %v541_v0, %v540_v4 }
 0x216   :  { %v525_v9 = vmul.f32 0.1, %v517_v5  ;;  %v537_v10 = vadd.f32 %v536_v6, %v535_v60  ;;  %v524_v11 = vadd.f32 %v523_v7, %v522_v62  ;;  %v543_v12 = vrot.slane %v542_v8, 1 }
 0x218   :  { %v545_v13 = vmul.f32 0.1, %v537_v10  ;;  %v547_v14 = vmul.f32 %v525_v9, %v525_v9  ;;  %v526_v15 = vmul.f32 0.1, %v524_v11  ;;  %v544_v16 = vadd.f32 %v543_v12, %v542_v8 }
 0x219   :  { %v553_v26 = vsub.f32 %v503_v35, %v525_v9  ;;  %v555_v27 = vsub.f32 %v505_v36, %v525_v9  ;;  %v1321_v35 = vld [vmem:[#allocation9 + $0x68] sm:$0xff]  }
 0x21a   :  { %v549_v17 = vsub.f32 %v545_v13, %v547_v14  ;;  %v546_v18 = vmul.f32 0.1, %v544_v16  ;;  %v548_v19 = vmul.f32 %v526_v15, %v526_v15  ;;  %v556_v28 = vsub.f32 %v506_v40, %v526_v15  ;;  %v1322_v36 = vld [vmem:[#allocation9 + $0x28] sm:$0xff]   ;;  %1185 = vmatprep.subr.bf16.mxu1 %v1321_v35  ;;  %v1324_v40 = vld [vmem:[#allocation9 + $0x20] sm:$0xff]  }
 0x21b   :  { %v554_v29 = vsub.f32 %v504_v38, %v526_v15  ;;  %1186 = vmatpush3.bf16.msra.mxu1 %v1322_v36  ;;  %v1323_v38 = vld [vmem:[#allocation9 + $0x60] sm:$0xff]  }
 0x21c   :  { %v551_v20 = vmax.f32 %v549_v17, 0.0  ;;  %v550_v21 = vsub.f32 %v546_v18, %v548_v19  ;;  %1187 = vmatprep.subr.bf16.mxu1 %v1323_v38 }
 0x21e   :  { %v557_v22 = vadd.f32 1e-07, %v551_v20  ;;  %v552_v23 = vmax.f32 %v550_v21, 0.0 }
 0x21f   :  { %1188 = vmatpush3.bf16.msra.mxu1 %v1324_v40 }
 0x220   :  { %1337 = vrsqrt.f32 %v557_v22  ;;  %v558_v24 = vadd.f32 1e-07, %v552_v23  ;;  %1189 = vmatprep.subr.bf16.mxu1 %v1325_v47 }
 0x222   :  { %1339 = vrsqrt.f32 %v558_v24 }
 0x223   :  { %1190 = vmatpush3.bf16.msra.mxu1 %v1326_v48 }
 0x224   :  { %1191 = vmatprep.subr.bf16.mxu1 %v1327_v49 }
 0x227   :  { %1192 = vmatpush3.bf16.msra.mxu1 %v1328_v50 }
 0x228   :  { %1193 = vmatprep.subr.bf16.mxu1 %v1329_v51 }
 0x22b   :  { %1194 = vmatpush3.bf16.msra.mxu1 %v1330_v52 }
 0x22c   :  { %1195 = vmatprep.subr.bf16.mxu1 %v1331_v53 }
 0x22d   :  { %v1338_v25 = vpop.eup %1337 }
 0x22e   :  { %v561_v31 = vmul.f32 %v1338_v25, %v553_v26  ;;  %v563_v32 = vmul.f32 %v1338_v25, %v555_v27 }
 0x22f   :  { %v1340_v30 = vpop.eup %1339  ;;  %1196 = vmatpush3.bf16.msra.mxu1 %v1332_v54 }
 0x230   :  { %v564_v33 = vmul.f32 %v1340_v30, %v556_v28  ;;  %v562_v34 = vmul.f32 %v1340_v30, %v554_v29  ;;  %v565_v39 = vpack.c.bf16 %v563_v32, %v561_v31 }
 0x232   :  { %v566_v37 = vpack.c.bf16 %v564_v33, %v562_v34 }
 0x234   :  { %804 = vmatprep.mubr.bf16.mxu0 %v566_v37 }
 0x235   :  { %805 = vmatmul.mubr.bf16.vlgmr.msra.gmra.mxu0 %v565_v39 }
 0x2f5   :  { %v806_v58 = vpop.f32.mrf.mxu0 }
 0x2f6   :  { %v807_v1 = vadd.f32 %v806_v58, %v605_v56 }
 0x2f7   :  { %v808_v63 = vpop.f32.mrf.mxu0 }
 0x2f8   :  { %v809_v2 = vadd.f32 %v808_v63, %v609_v61  ;;  %v815_v60 = vmax.f32 %v807_v1, 0.0 }
 0x2f9   :  { %v810_v3 = vpop.f32.mrf.mxu0 }
 0x2fa   :  { %v811_v4 = vadd.f32 %v810_v3, %v605_v56  ;;  %v816_v5 = vmax.f32 %v809_v2, 0.0  ;;  %v839_v8 = vmul.f32 %v815_v60, %v815_v60 }
 0x2fb   :  { %v812_v59 = vpop.f32.mrf.mxu0 }
 0x2fc   :  { %v817_v62 = vmax.f32 %v811_v4, 0.0  ;;  %v813_v0 = vadd.f32 %v812_v59, %v609_v61  ;;  %v840_v11 = vmul.f32 %v816_v5, %v816_v5 }
 0x2fe   :  { %v821_v6 = vmul.f32 %v1538_v57, %v817_v62  ;;  %v818_v7 = vmax.f32 %v813_v0, 0.0  ;;  %v1164_v0 = vld [vmem:[%s1570_s5 + $0x3] ss:$0 sm:$0xff] }
 0x300   :  { %v823_v9 = vadd.f32 %v821_v6, %v815_v60  ;;  %v841_v10 = vmul.f32 %v821_v6, %v821_v6  ;;  %v822_v44 = vmul.f32 %v1538_v57, %v818_v7 }
 0x302   :  { %v824_v46 = vrot.slane %v823_v9, 4  ;;  %v843_v12 = vadd.f32 %v841_v10, %v839_v8  ;;  %v830_v13 = vadd.f32 %v822_v44, %v816_v5  ;;  %v842_v14 = vmul.f32 %v822_v44, %v822_v44 }
 0x304   :  { %v825_v15 = vadd.f32 %v824_v46, %v823_v9  ;;  %v844_v16 = vrot.slane %v843_v12, 4  ;;  %v831_v17 = vrot.slane %v830_v13, 4  ;;  %v850_v18 = vadd.f32 %v842_v14, %v840_v11 }
 0x306   :  { %v826_v19 = vrot.slane %v825_v15, 2  ;;  %v845_v20 = vadd.f32 %v844_v16, %v843_v12  ;;  %v832_v21 = vadd.f32 %v831_v17, %v830_v13  ;;  %v851_v22 = vrot.slane %v850_v18, 4 }
 0x308   :  { %v827_v23 = vadd.f32 %v826_v19, %v825_v15  ;;  %v846_v24 = vrot.slane %v845_v20, 2  ;;  %v833_v25 = vrot.slane %v832_v21, 2  ;;  %v852_v26 = vadd.f32 %v851_v22, %v850_v18 }
 0x30a   :  { %v828_v27 = vrot.slane %v827_v23, 1  ;;  %v847_v28 = vadd.f32 %v846_v24, %v845_v20  ;;  %v834_v57 = vadd.f32 %v833_v25, %v832_v21  ;;  %v853_v29 = vrot.slane %v852_v26, 2 }
 0x30c   :  { %v829_v30 = vadd.f32 %v828_v27, %v827_v23  ;;  %v848_v31 = vrot.slane %v847_v28, 1  ;;  %v835_v32 = vrot.slane %v834_v57, 1  ;;  %v854_v33 = vadd.f32 %v853_v29, %v852_v26 }
 0x30e   :  { %v837_v34 = vmul.f32 0.1, %v829_v30  ;;  %v849_v37 = vadd.f32 %v848_v31, %v847_v28  ;;  %v836_v39 = vadd.f32 %v835_v32, %v834_v57  ;;  %v855_v41 = vrot.slane %v854_v33, 1 }
 0x310   :  { %v857_v42 = vmul.f32 0.1, %v849_v37  ;;  %v859_v43 = vmul.f32 %v837_v34, %v837_v34  ;;  %v838_v45 = vmul.f32 0.1, %v836_v39  ;;  %v856_v35 = vadd.f32 %v855_v41, %v854_v33 }
 0x311   :  { %v865_v53 = vsub.f32 %v815_v60, %v837_v34  ;;  %v867_v54 = vsub.f32 %v817_v62, %v837_v34 }
 0x312   :  { %v861_v36 = vsub.f32 %v857_v42, %v859_v43  ;;  %v858_v38 = vmul.f32 0.1, %v856_v35  ;;  %v860_v40 = vmul.f32 %v838_v45, %v838_v45  ;;  %v868_v55 = vsub.f32 %v818_v7, %v838_v45 }
 0x313   :  { %v866_v56 = vsub.f32 %v816_v5, %v838_v45 }
 0x314   :  { %v863_v47 = vmax.f32 %v861_v36, 0.0  ;;  %v862_v48 = vsub.f32 %v858_v38, %v860_v40 }
 0x316   :  { %v869_v49 = vadd.f32 1e-07, %v863_v47  ;;  %v864_v50 = vmax.f32 %v862_v48, 0.0 }
 0x318   :  { %1341 = vrsqrt.f32 %v869_v49  ;;  %v870_v51 = vadd.f32 1e-07, %v864_v50 }
 0x31a   :  { %1343 = vrsqrt.f32 %v870_v51 }
 0x325   :  { %v1342_v52 = vpop.eup %1341 }
 0x326   :  { %v873_v61 = vmul.f32 %v1342_v52, %v865_v53  ;;  %v875_v63 = vmul.f32 %v1342_v52, %v867_v54 }
 0x327   :  { %v1344_v58 = vpop.eup %1343 }
 0x328   :  { %v876_v1 = vmul.f32 %v1344_v58, %v868_v55  ;;  %v874_v2 = vmul.f32 %v1344_v58, %v866_v56  ;;  %v877_v4 = vpack.c.bf16 %v875_v63, %v873_v61 }
 0x32a   :  { %v878_v3 = vpack.c.bf16 %v876_v1, %v874_v2 }
 0x32c   :  { %1044 = vmatprep.mubr.bf16.mxu1 %v878_v3 }
 0x32d   :  { %1045 = vmatmul.mubr.bf16.vlgmr.msra.gmra.mxu1 %v877_v4 }
 0x3ed   :  { %v1197_v59 = vpop.f32.mrf.mxu1 }
 0x3ef   :  { %v1198_v6 = vpop.f32.mrf.mxu1 }
 0x3f0   :  { %v1199_v8 = vadd.f32 %v1198_v6, %v1197_v59 }
 0x3f1   :  { %v1200_v60 = vpop.f32.mrf.mxu1 }
 0x3f2   :  { %v1047_v62 = vadd.f32 %v1199_v8, %v1164_v0 }
 0x3f3   :  { %v1201_v7 = vpop.f32.mrf.mxu1 }
 0x3f4   :  { %v1055_v5 = vmin.f32 %v1047_v62, 20.0  ;;  %v1202_v9 = vadd.f32 %v1201_v7, %v1200_v60  ;;  %vm1053_vm4 = vcmp.gt.f32.partialorder %v1047_v62, 20.0 }
 0x3f6   :  { %v1057_v10 = vmul.f32 1.442695, %v1055_v5  ;;  %v1050_v44 = vadd.f32 %v1202_v9, %v1164_v0 }
 0x3f8   :  { %1345 = vpow2.f32 %v1057_v10  ;;  %v1056_v11 = vmin.f32 %v1050_v44, 20.0  ;;  %vm1054_vm6 = vcmp.gt.f32.partialorder %v1050_v44, 20.0 }
 0x3fa   :  { %v1059_v46 = vmul.f32 1.442695, %v1056_v11 }
 0x3fc   :  { %1347 = vpow2.f32 %v1059_v46 }
 0x405   :  { %v1346_v12 = vpop.eup %1345 }
 0x406   :  { %v1061_v13 = vadd.f32 1.0, %v1346_v12  ;;  %v1064_v16 = vmul.f32 -0.5, %v1346_v12  ;;  %v1067_v19 = vand.u32 2147483647, %v1346_v12 }
 0x408   :  { %1349 = vlog2.f32 %v1061_v13  ;;  %v1065_v17 = vadd.f32 1.0, %v1064_v16  ;;  %vm1068_vm2 = vcmp.lt.f32.partialorder %v1067_v19, 0.0004427343 }
 0x409   :  { %v1348_v14 = vpop.eup %1347 }
 0x40a   :  { %v1070_v15 = vadd.f32 1.0, %v1348_v14  ;;  %v1073_v18 = vmul.f32 -0.5, %v1348_v14  ;;  %v1066_v22 = vmul.f32 %v1346_v12, %v1065_v17  ;;  %v1076_v24 = vand.u32 2147483647, %v1348_v14 }
 0x40c   :  { %1351 = vlog2.f32 %v1070_v15  ;;  %v1074_v23 = vadd.f32 1.0, %v1073_v18  ;;  %vm1077_vm5 = vcmp.lt.f32.partialorder %v1076_v24, 0.0004427343 }
 0x40e   :  { %v1075_v57 = vmul.f32 %v1348_v14, %v1074_v23 }
 0x415   :  { %v1350_v20 = vpop.eup %1349 }
 0x416   :  { %v1063_v21 = vmul.f32 0.6931472, %v1350_v20 }
 0x418   :  { %v1069_v25 = vsel %vm1068_vm2, %v1066_v22, %v1063_v21 }
 0x419   :  { %v1352_v26 = vpop.eup %1351  ;;  %v1079_v27 = vsel %vm1053_vm4, %v1047_v62, %v1069_v25 }
 0x41a   :  { %1082 = vst.msk [vmem:[%s1571_s6] sm:$0xff] %vm1081_vm3, %v1079_v27  ;;  %v1072_v28 = vmul.f32 0.6931472, %v1352_v26 }
 0x41c   :  { %v1078_v29 = vsel %vm1077_vm5, %v1075_v57, %v1072_v28 }
 0x41d   :  { %v1080_v30 = vsel %vm1054_vm6, %v1050_v44, %v1078_v29 }
 0x41e   :  { %1083 = vst.msk [vmem:[%s1571_s6 + $0x8] sm:$0xff] %vm1081_vm3, %v1080_v30 }
 0x41f   :  { %1088 = vsyncpa [#allocation3], 1 }
 0x420   :  { %1089 = vsyncpa [#allocation5], 1 }
 0x421   :  { %1090 = vsyncpa [#allocation8], 1 }

</bundles_post_ra>
